<compile_context>
chip_gen: v7x
topology: tpu7x:2x2x1
jax: 0.10.0
libtpu: 0.0.40
codegen_flags: <defaults>
</compile_context>

<pallas_src>
import jax
import jax.numpy as jnp
from jax.experimental import pallas as pl
from jax.experimental.pallas import tpu as pltpu  # noqa: F401  (TPU backend)


NEG_BIG = -1e30  # pad-label bias: exp(NEG_BIG - max) underflows to exactly 0


def pipeline_kernel(ids_ref, tbl_ref, w_enc_ref, b_enc_ref, w_cls_ref,
                    b_cls_ref, out_ref):
    # ids_ref:   (N, 1)  int32 flattened token ids (N = B*S)
    # tbl_ref:   (V, D)  word-embedding table (resident in VMEM)
    # w_enc:     (D, H), b_enc: (1, H)
    # w_cls:     (H, Lp), b_cls: (1, Lp)   (Lp = 128, lane-dense padded labels)
    # out_ref:   (N, Lp) log-probs (pad columns are garbage, sliced off outside)
    ids = ids_ref[...]                                   # (N, 1) int32
    n, v = ids.shape[0], tbl_ref.shape[0]

    # Fused embedding lookup (WordVecLookup): one-hot gather on the MXU.
    vocab_iota = jax.lax.broadcasted_iota(jnp.int32, (n, v), 1)
    one_hot = (ids == vocab_iota).astype(jnp.float32)    # (N, V)
    x = jnp.dot(one_hot, tbl_ref[...],
                preferred_element_type=jnp.float32)      # (N, D) exact gather

    # Encoder: dense projection + tanh  (stand-in for the RNN encoder)
    h = jnp.tanh(
        jnp.dot(x, w_enc_ref[...], preferred_element_type=jnp.float32)
        + b_enc_ref[...]
    )                                                    # (N, H)

    # Classifier: linear to (padded) label scores.
    scores = (
        jnp.dot(h, w_cls_ref[...], preferred_element_type=jnp.float32)
        + b_cls_ref[...]
    )                                                    # (N, Lp)

    # logic_layer: no constraint layers configured -> identity.

    # nn.LogSoftmax(2): log-softmax over the label axis.  Pad columns carry a
    # -1e30 bias, so they never win the max and their exp underflows to 0 —
    # the normalizer only sums the real L labels.
    m = jnp.max(scores, axis=-1, keepdims=True)
    shifted = scores - m
    lse = jnp.log(jnp.sum(jnp.exp(shifted), axis=-1, keepdims=True))
    out_ref[...] = (shifted - lse).astype(out_ref.dtype)


def pipeline_forward(sent_ids, emb_table, w_enc, b_enc, w_cls, b_cls,
                     label_pad=128):
    """sent_ids: (B, S) int32 token ids.  Returns (B, S, L) log-probs."""
    B, S = sent_ids.shape
    V, D = emb_table.shape
    H = w_enc.shape[1]
    L = w_cls.shape[1]
    N = B * S
    LP = max(label_pad, L)

    ids2 = sent_ids.reshape(N, 1).astype(jnp.int32)
    b_enc2 = b_enc.reshape(1, H).astype(jnp.float32)

    # Pad classifier to LP labels so the output store is a full-lane write.
    w_cls_p = jnp.zeros((H, LP), jnp.float32).at[:, :L].set(w_cls)
    b_cls_p = jnp.full((1, LP), NEG_BIG, jnp.float32).at[0, :L].set(b_cls)

    out_padded = pl.pallas_call(
        pipeline_kernel,
        out_shape=jax.ShapeDtypeStruct((N, LP), jnp.float32),
        grid_spec=pl.GridSpec(
            grid=(1,),  # single fused step: all B*S tokens at once
            in_specs=[
                pl.BlockSpec((N, 1), lambda i: (0, 0)),
                pl.BlockSpec((V, D), lambda i: (0, 0)),
                pl.BlockSpec((D, H), lambda i: (0, 0)),
                pl.BlockSpec((1, H), lambda i: (0, 0)),
                pl.BlockSpec((H, LP), lambda i: (0, 0)),
                pl.BlockSpec((1, LP), lambda i: (0, 0)),
            ],
            out_specs=pl.BlockSpec((N, LP), lambda i: (0, 0)),
        ),
    )(ids2, emb_table, w_enc, b_enc2, w_cls_p, b_cls_p)

    # Drop pad labels, restore (B, S, L) layout.
    return out_padded[:, :L].reshape(B, S, L)


def pure_jax_ref(sent_ids, emb_table, w_enc, b_enc, w_cls, b_cls):
    emb = emb_table[sent_ids]
    h = jnp.tanh(emb @ w_enc + b_enc)
    scores = h @ w_cls + b_cls
    return jax.nn.log_softmax(scores, axis=2)


if __name__ == "__main__":
    # Small shapes consistent with the forward:
    #   batch_l=2, source_l=8, word_vec_size=32, hidden_size=32, num_labels=8
    B, S, V, D, H, L = 2, 8, 50, 32, 32, 8

    key = jax.random.PRNGKey(0)
    k_emb, k_ids, k_we, k_wc = jax.random.split(key, 4)

    # Deterministic "xavier_uniform"-style init; biases zero (init_weight()).
    emb_table = jax.random.uniform(k_emb, (V, D), jnp.float32, -0.1, 0.1)
    lim_enc = (6.0 / (D + H)) ** 0.5
    w_enc = jax.random.uniform(k_we, (D, H), jnp.float32, -lim_enc, lim_enc)
    b_enc = jnp.zeros((H,), jnp.float32)
    lim_cls = (6.0 / (H + L)) ** 0.5
    w_cls = jax.random.uniform(k_wc, (H, L), jnp.float32, -lim_cls, lim_cls)
    b_cls = jnp.zeros((L,), jnp.float32)

    sent_ids = jax.random.randint(k_ids, (B, S), 0, V, dtype=jnp.int32)

    out = pipeline_forward(sent_ids, emb_table, w_enc, b_enc, w_cls, b_cls)
    out = jax.block_until_ready(out)

    ref = pure_jax_ref(sent_ids, emb_table, w_enc, b_enc, w_cls, b_cls)
    assert out.shape == (B, S, L)
    assert jnp.allclose(out, ref, atol=1e-5, rtol=1e-5)

    print("KERNEL_OK")
</pallas_src>

<mosaic_0001>
module attributes {stable_mosaic.version = 11 : i64} {
  func.func @pipeline_kernel(%arg0: i32, %arg1: memref<16x1xi32, #tpu.memory_space<vmem>>, %arg2: memref<50x32xf32, #tpu.memory_space<vmem>>, %arg3: memref<32x32xf32, #tpu.memory_space<vmem>>, %arg4: memref<1x32xf32, #tpu.memory_space<vmem>>, %arg5: memref<32x128xf32, #tpu.memory_space<vmem>>, %arg6: memref<1x128xf32, #tpu.memory_space<vmem>>, %arg7: memref<16x128xf32, #tpu.memory_space<vmem>>) attributes {dimension_semantics = [#tpu.dimension_semantics<arbitrary>], iteration_bounds = array<i64: 1>, scalar_prefetch = 0 : i64, scratch_operands = 0 : i64, tpu.core_type = #tpu.core_type<tc>, window_params = [{pipeline_mode = #tpu.pipeline_mode<synchronous>, transform_indices = @transform_0, window_bounds = array<i64: 16, 1>}, {pipeline_mode = #tpu.pipeline_mode<synchronous>, transform_indices = @transform_1, window_bounds = array<i64: 50, 32>}, {pipeline_mode = #tpu.pipeline_mode<synchronous>, transform_indices = @transform_2, window_bounds = array<i64: 32, 32>}, {pipeline_mode = #tpu.pipeline_mode<synchronous>, transform_indices = @transform_3, window_bounds = array<i64: 1, 32>}, {pipeline_mode = #tpu.pipeline_mode<synchronous>, transform_indices = @transform_4, window_bounds = array<i64: 32, 128>}, {pipeline_mode = #tpu.pipeline_mode<synchronous>, transform_indices = @transform_5, window_bounds = array<i64: 1, 128>}, {pipeline_mode = #tpu.pipeline_mode<synchronous>, transform_indices = @transform_6, window_bounds = array<i64: 16, 128>}]} {
    %c0 = arith.constant 0 : index
    %c0_0 = arith.constant 0 : index
    %0 = vector.load %arg1[%c0, %c0_0] : memref<16x1xi32, #tpu.memory_space<vmem>>, vector<16x1xi32>
    %1 = tpu.iota {dimensions = array<i32: 1>} : vector<16x50xi32>
    %2 = vector.broadcast %0 : vector<16x1xi32> to vector<16x50xi32>
    %3 = arith.cmpi eq, %2, %1 : vector<16x50xi32>
    %4 = arith.extui %3 : vector<16x50xi1> to vector<16x50xi32>
    %5 = arith.sitofp %4 : vector<16x50xi32> to vector<16x50xf32>
    %c0_1 = arith.constant 0 : index
    %c0_2 = arith.constant 0 : index
    %6 = vector.load %arg2[%c0_1, %c0_2] : memref<50x32xf32, #tpu.memory_space<vmem>>, vector<50x32xf32>
    %cst = arith.constant dense<0.000000e+00> : vector<16x32xf32>
    %7 = tpu.matmul %5, %6, %cst {dimension_numbers = #tpu.dot_dimension_numbers<[1], [0], [0], [1], [0, 0, 1, 1], [], []>} : vector<16x50xf32>, vector<50x32xf32>, vector<16x32xf32> -> vector<16x32xf32>
    %c0_3 = arith.constant 0 : index
    %c0_4 = arith.constant 0 : index
    %8 = vector.load %arg3[%c0_3, %c0_4] : memref<32x32xf32, #tpu.memory_space<vmem>>, vector<32x32xf32>
    %cst_5 = arith.constant dense<0.000000e+00> : vector<16x32xf32>
    %9 = tpu.matmul %7, %8, %cst_5 {dimension_numbers = #tpu.dot_dimension_numbers<[1], [0], [0], [1], [0, 0, 1, 1], [], []>} : vector<16x32xf32>, vector<32x32xf32>, vector<16x32xf32> -> vector<16x32xf32>
    %c0_6 = arith.constant 0 : index
    %c0_7 = arith.constant 0 : index
    %10 = vector.load %arg4[%c0_6, %c0_7] : memref<1x32xf32, #tpu.memory_space<vmem>>, vector<1x32xf32>
    %11 = vector.broadcast %10 : vector<1x32xf32> to vector<16x32xf32>
    %12 = arith.addf %9, %11 : vector<16x32xf32>
    %13 = math.tanh %12 : vector<16x32xf32>
    %c0_8 = arith.constant 0 : index
    %c0_9 = arith.constant 0 : index
    %14 = vector.load %arg5[%c0_8, %c0_9] : memref<32x128xf32, #tpu.memory_space<vmem>>, vector<32x128xf32>
    %cst_10 = arith.constant dense<0.000000e+00> : vector<16x128xf32>
    %15 = tpu.matmul %13, %14, %cst_10 {dimension_numbers = #tpu.dot_dimension_numbers<[1], [0], [0], [1], [0, 0, 1, 1], [], []>} : vector<16x32xf32>, vector<32x128xf32>, vector<16x128xf32> -> vector<16x128xf32>
    %c0_11 = arith.constant 0 : index
    %c0_12 = arith.constant 0 : index
    %16 = vector.load %arg6[%c0_11, %c0_12] : memref<1x128xf32, #tpu.memory_space<vmem>>, vector<1x128xf32>
    %17 = vector.broadcast %16 : vector<1x128xf32> to vector<16x128xf32>
    %18 = arith.addf %15, %17 : vector<16x128xf32>
    %cst_13 = arith.constant dense<0xFF800000> : vector<16xf32>
    %19 = vector.multi_reduction <maximumf>, %18, %cst_13 [1] : vector<16x128xf32> to vector<16xf32>
    %20 = vector.shape_cast %19 : vector<16xf32> to vector<16x1xf32>
    %21 = vector.broadcast %20 : vector<16x1xf32> to vector<16x128xf32>
    %22 = arith.subf %18, %21 : vector<16x128xf32>
    %23 = math.exp %22 : vector<16x128xf32>
    %cst_14 = arith.constant dense<0.000000e+00> : vector<16xf32>
    %24 = vector.multi_reduction <add>, %23, %cst_14 [1] : vector<16x128xf32> to vector<16xf32>
    %25 = vector.shape_cast %24 : vector<16xf32> to vector<16x1xf32>
    %26 = math.log %25 : vector<16x1xf32>
    %27 = vector.broadcast %26 : vector<16x1xf32> to vector<16x128xf32>
    %28 = arith.subf %22, %27 : vector<16x128xf32>
    %c0_15 = arith.constant 0 : index
    %c0_16 = arith.constant 0 : index
    %29 = vector.load %arg7[%c0_15, %c0_16] : memref<16x128xf32, #tpu.memory_space<vmem>>, vector<16x128xf32>
    tpu.vector_store %arg7[%c0_15, %c0_16], %28 {strides = array<i32>} : memref<16x128xf32, #tpu.memory_space<vmem>>, vector<16x128xf32>,
    return
  }
  func.func @transform_0(%arg0: i32) -> (i32, i32) {
    %c0_i32 = arith.constant 0 : i32
    %c0_i32_0 = arith.constant 0 : i32
    %c0_i32_1 = arith.constant 0 : i32
    return %c0_i32, %c0_i32_0 : i32, i32
  }
  func.func @transform_1(%arg0: i32) -> (i32, i32) {
    %c0_i32 = arith.constant 0 : i32
    %c0_i32_0 = arith.constant 0 : i32
    %c0_i32_1 = arith.constant 0 : i32
    return %c0_i32, %c0_i32_0 : i32, i32
  }
  func.func @transform_2(%arg0: i32) -> (i32, i32) {
    %c0_i32 = arith.constant 0 : i32
    %c0_i32_0 = arith.constant 0 : i32
    %c0_i32_1 = arith.constant 0 : i32
    return %c0_i32, %c0_i32_0 : i32, i32
  }
  func.func @transform_3(%arg0: i32) -> (i32, i32) {
    %c0_i32 = arith.constant 0 : i32
    %c0_i32_0 = arith.constant 0 : i32
    %c0_i32_1 = arith.constant 0 : i32
    return %c0_i32, %c0_i32_0 : i32, i32
  }
  func.func @transform_4(%arg0: i32) -> (i32, i32) {
    %c0_i32 = arith.constant 0 : i32
    %c0_i32_0 = arith.constant 0 : i32
    %c0_i32_1 = arith.constant 0 : i32
    return %c0_i32, %c0_i32_0 : i32, i32
  }
  func.func @transform_5(%arg0: i32) -> (i32, i32) {
    %c0_i32 = arith.constant 0 : i32
    %c0_i32_0 = arith.constant 0 : i32
    %c0_i32_1 = arith.constant 0 : i32
    return %c0_i32, %c0_i32_0 : i32, i32
  }
  func.func @transform_6(%arg0: i32) -> (i32, i32) {
    %c0_i32 = arith.constant 0 : i32
    %c0_i32_0 = arith.constant 0 : i32
    %c0_i32_1 = arith.constant 0 : i32
    return %c0_i32, %c0_i32_0 : i32, i32
  }
}

</mosaic_0001>

<bundles_post_ra>
// kernel: tpu_custom_call.1
= control target key start
LH: loop header
LB: loop body
LE: loop exit
PB: predicated region body
PF: predicated region fallthrough
CT: control target
= control target key end

     0   :  { %v499_v2 = vmov 0   ;;  %s612_s0 = inlined_call_operand.vmem [shape: s32[16,1], index: 0, kind: input, shape index: {}]   ;;  %s613_s1 = inlined_call_operand.vmem [shape: f32[50,32], index: 1, kind: input, shape index: {}]   ;;  %s614_s2 = inlined_call_operand.vmem [shape: f32[32,32], index: 2, kind: input, shape index: {}]   ;;  %s615_s3 = inlined_call_operand.vmem [shape: f32[1,32], index: 3, kind: input, shape index: {}]   ;;  %s616_s4 = inlined_call_operand.vmem [shape: f32[32,128], index: 4, kind: input, shape index: {}]   ;;  %s617_s5 = inlined_call_operand.vmem [shape: f32[1,128], index: 5, kind: input, shape index: {}]   ;;  %s618_s6 = inlined_call_operand.hbm [shape: f32[16,128], index: 6, kind: output, shape index: {}]  }
   0x1   :  { %v24_v0 = vld [vmem:[%s612_s0] sm:$0xff]  ;;  %462 = vset.pattern.permute.xlu0 %v499_v2  ;;  %v41_v3 = vld [vmem:[%s613_s1 + $0x8] sm:$0xff]  ;;  %v42_v4 = vld [vmem:[%s613_s1 + $0x10] sm:$0xff] }
   0x2   :  { %v40_v1 = vld [vmem:[%s613_s1] sm:$0xff]  ;;  %v43_v5 = vld [vmem:[%s613_s1 + $0x18] sm:$0xff]  ;;  %29 = vperm.xlu0 %462, %v24_v0  }
   0x3   :  { %v429_v6 = vpack.c.bf16 %v41_v3, %v40_v1  ;;  %v433_v7 = vpack.c.bf16 %v43_v5, %v42_v4 }
   0x4   :  { %11 = vsyncpa [#allocation3], 0  ;;  %v25_v8 = vld [vmem:[%s612_s0 + $0x8] sm:$0xff]  ;;  %v44_v9 = vld [vmem:[%s613_s1 + $0x20] sm:$0xff]  ;;  %vm54_vm0 = vcmask 1041408   ;;  %v26_v19 = vlaneseq  ;;  %vm47_vm1 = vcmask 408576  }
   0x5   :  { %v45_v10 = vld [vmem:[%s613_s1 + $0x28] sm:$0xff]  ;;  %430 = vmatprep.subr.bf16.mxu0 %v429_v6  ;;  %v133_v12 = vld [vmem:[%s614_s2] sm:$0xff]  ;;  %v135_v14 = vld [vmem:[%s614_s2 + $0x10] sm:$0xff]  ;;  %v500_v22 = vmov 0.0   ;;  %vm144_vm4 = vcmask 261120  }
   0x6   :  { %432 = vmatpush3.bf16.msra.mxu0 %v429_v6  ;;  %32 = vperm.xlu0 %462, %v25_v8   ;;  %v437_v11 = vpack.c.bf16 %v45_v10, %v44_v9  ;;  %v134_v13 = vld [vmem:[%s614_s2 + $0x8] sm:$0xff]  ;;  %v136_v16 = vld [vmem:[%s614_s2 + $0x18] sm:$0xff]  ;;  %v46_v18 = vld [vmem:[%s613_s1 + $0x30] sm:$0x3]  ;;  %v27_v20 = vand.u32 127, %v26_v19 }
   0x7   :  { %434 = vmatprep.subr.bf16.mxu0 %v433_v7  ;;  %v441_v15 = vpack.c.bf16 %v134_v13, %v133_v12  ;;  %v445_v17 = vpack.c.bf16 %v136_v16, %v135_v14  ;;  %v228_v28 = vld [vmem:[%s616_s4] sm:$0xff]  ;;  %v229_v29 = vld [vmem:[%s616_s4 + $0x8] sm:$0xff]  ;;  %v230_v30 = vld [vmem:[%s616_s4 + $0x10] sm:$0xff] }
   0x8   :  { %v449_v31 = vpack.c.bf16 %v229_v29, %v228_v28  ;;  %v231_v32 = vld [vmem:[%s616_s4 + $0x18] sm:$0xff]  ;;  %v363_v34 = vld [vmem:[%s615_s3] ss:$0 sm:$0xff]  ;;  %s501_s3 = smov [#allocation2]  }
   0x9   :  { %442 = vmatprep.subr.bf16.mxu1 %v441_v15  ;;  %v453_v33 = vpack.c.bf16 %v231_v32, %v230_v30  ;;  %v366_v41 = vld [vmem:[%s617_s5] ss:$0 sm:$0xff]  ;;  %s347_s5 = sshll.u32 %s501_s3, 4  ;;  %s348_s5 = int_to_ptr.vmem [resolvable:$true] %s347_s5 }
   0xa   :  { %436 = vmatpush3.bf16.msra.mxu0 %v433_v7  ;;  %444 = vmatpush3.bf16.msra.mxu1 %v441_v15  ;;  %s475_s7 = scalar_lea.vmem %s348_s5, 256  ;;  %p480_p1 = scmp.lt.s32.totalorder %s348_s5, %s348_s5 }
   0xb   :  { %438 = vmatprep.subr.bf16.mxu0 %v437_v11  ;;  %446 = vmatprep.subr.bf16.mxu1 %v445_v17  ;;  %p476_p0 = scmp.ne.s32.totalorder %s348_s5, %s475_s7  ;;  %p481_p2 = scmp.lt.s32.totalorder %s475_s7, %s475_s7 }
   0xd   :  { %p482_p3 = por %p481_p2, %p480_p1 }
   0xe   :  { %440 = vmatpush3.bf16.msra.mxu0 %v437_v11  ;;  %448 = vmatpush3.bf16.msra.mxu1 %v445_v17 }
   0xf   :  { %402 = vmatprep.subr.msk.mxu0 %vm54_vm0, %v46_v18  ;;  %450 = vmatprep.subr.bf16.mxu1 %v449_v31  ;;  %p483_p4 = pnand %p482_p3, %p476_p0 }
  0x12   :  { %403 = vmatpush3.msk.msra.mxu0 %vm54_vm0, %v46_v18 }
  0x81   :  { %v30_v21 = vpop.permute.xlu0 %29 }
  0x82   :  { %vm34_vm2 = vcmp.eq.s32.totalorder %v30_v21, %v27_v20 }
  0x83   :  { %v358_v23 = vsel %vm34_vm2, 1.0, %v500_v22 }
  0x84   :  { %404 = vmatprep.mubr.msk.f32.mxu0 %vm47_vm1, %v358_v23 }
  0x85   :  { %v33_v24 = vpop.permute.xlu0 %32 }
  0x86   :  { %vm35_vm3 = vcmp.eq.s32.totalorder %v33_v24, %v27_v20 }
  0x87   :  { %v359_v25 = vsel %vm35_vm3, 1.0, %v500_v22 }
  0x88   :  { %405 = vmatmul.mubr.msk.f32.vlgmr.msra.gmra.mrb[0].mxu0 %vm47_vm1, %v359_v25 }
 0x15b   :  { %v406_v26 = vpop.f32.mrb[0].mxu0 }
 0x15c   :  { %v124_v27 = vpop.f32.mrb[1].mxu0 }
 0x15d   :  { %415 = vmatprep.mubr.msk.f32.mxu1 %vm144_vm4, %v124_v27 }
 0x15e   :  { %416 = vmatmul.mubr.msk.f32.vlgmr.msra.gmra.mrb[0].mxu1 %vm144_vm4, %v406_v26 }
 0x15f   :  { %452 = vmatpush3.bf16.msra.mxu1 %v449_v31 }
 0x160   :  { %454 = vmatprep.subr.bf16.mxu1 %v453_v33 }
 0x163   :  { %456 = vmatpush3.bf16.msra.mxu1 %v453_v33 }
 0x231   :  { %v417_v35 = vpop.f32.mrb[0].mxu1 }
 0x232   :  { %v223_v36 = vadd.f32 %v417_v35, %v363_v34  ;;  %v217_v37 = vpop.f32.mrb[1].mxu1 }
 0x233   :  { %v218_v38 = vadd.f32 %v363_v34, %v217_v37 }
 0x235   :  { %463 = vtanh.f32 %v218_v38 }
 0x236   :  { %465 = vtanh.f32 %v223_v36 }
 0x23f   :  { %v464_v39 = vpop.eup %463 }
 0x240   :  { %v466_v40 = vpop.eup %465  ;;  %426 = vmatprep.mubr.msk.f32.mxu1 %vm144_vm4, %v464_v39 }
 0x241   :  { %427 = vmatmul.mubr.msk.f32.vlgmr.msra.gmra.mrb[2].mxu1 %vm144_vm4, %v466_v40 }
 0x314   :  { %v428_v42 = vpop.f32.mrb[2].mxu1 }
 0x315   :  { %v311_v43 = vpop.f32.mrb[3].mxu1  ;;  %v317_v45 = vadd.f32 %v428_v42, %v366_v41 }
 0x316   :  { %v312_v44 = vadd.f32 %v366_v41, %v311_v43 }
 0x318   :  { %320 = vmax.xlane.f32.xlu1 %v312_v44 }
 0x31c   :  { %322 = vmax.xlane.f32.xlu1 %v317_v45 }
 0x3a5   :  { %v321_v46 = vpop.xlane.xlu1 %320 }
 0x3a6   :  { %v324_v47 = vsub.f32 %v312_v44, %v321_v46 }
 0x3a8   :  { %v326_v48 = vmul.f32 1.442695, %v324_v47 }
 0x3a9   :  { %v323_v49 = vpop.xlane.xlu1 %322 }
 0x3aa   :  { %467 = vpow2.f32 %v326_v48  ;;  %v325_v50 = vsub.f32 %v317_v45, %v323_v49 }
 0x3ac   :  { %v328_v51 = vmul.f32 1.442695, %v325_v50 }
 0x3ae   :  { %469 = vpow2.f32 %v328_v51 }
 0x3b4   :  { %v468_v52 = vpop.eup %467 }
 0x3b5   :  { %330 = vadd.xlane.f32.xlu0 %v468_v52 }
 0x3b8   :  { %v470_v53 = vpop.eup %469 }
 0x3b9   :  { %332 = vadd.xlane.f32.xlu1 %v470_v53 }
 0x442   :  { %v331_v54 = vpop.xlane.xlu0 %330 }
 0x443   :  { %471 = vlog2.f32 %v331_v54 }
 0x446   :  { %v333_v55 = vpop.xlane.xlu1 %332 }
 0x447   :  { %473 = vlog2.f32 %v333_v55 }
 0x44d   :  { %v472_v56 = vpop.eup %471 }
 0x44e   :  { %v335_v57 = vmul.f32 0.6931472, %v472_v56 }
 0x450   :  { %v338_v58 = vsub.f32 %v324_v47, %v335_v57 }
 0x451   :  { %v474_v59 = vpop.eup %473 }
 0x452   :  { %340 = vst [vmem:[#allocation2] sm:$0xff] %v338_v58  ;;  %v337_v60 = vmul.f32 0.6931472, %v474_v59 }
 0x454   :  { %v339_v61 = vsub.f32 %v325_v50, %v337_v60 }
 0x456   :  { %341 = vst [vmem:[#allocation2 + $0x8] sm:$0xff] %v339_v61 }
 0x457   :  { %486 = shalt.err (!%p483_p4)
}
 0x458   :  { %s487_s10 = scalar_lea.hbm %s618_s6, 256 }
 0x459   :  { %p488_p5 = scmp.ne.s32.totalorder %s618_s6, %s487_s10  ;;  %p491_p6 = scmp.lt.u32.totalorder %s487_s10, %s618_s6 }
 0x45b   :  { %p493_p7 = pnand %p491_p6, %p488_p5 }
 0x45d   :  { %496 = shalt.err (!%p493_p7)
}
 0x45e   :  { %s502_s15 = smov 128   ;;  %s503_s16 = smov 8  }
 0x45f   :  { %353 = dma.vmem_to_hbm [thread:$0]  %s348_s5, 256, %s618_s6, [#allocation3], %s502_s15, %s502_s15, %s503_s16  }
 0x460   :  { %497 = dma.done.wait [#allocation3], 256  }
 0x461   :  { %498 = vsyncadd [#allocation3], 4294967040 }
 0x462   :  { %357 = vsyncpa [#allocation3], 1 }

</bundles_post_ra>
